<compile_context>
chip_gen: v7x
topology: tpu7x:2x2x1
jax: 0.10.0
libtpu: 0.0.40
codegen_flags: <defaults>
</compile_context>

<pallas_src>
import functools

import jax
import jax.numpy as jnp
from jax.experimental import pallas as pl
from jax.experimental.pallas import tpu as pltpu


# ---------------------------------------------------------------------------
# Kernel body (shared by the gridless and the batch-tiled paths).
# ---------------------------------------------------------------------------
def _decoder_kernel(z_ref, w1_ref, b1_ref, w2_ref, b2_ref, y_ref):
    # Layer 1: bf16 MXU matmul, f32 accumulate; bias + tanh in f32 (VPU/EUP).
    h = jnp.dot(z_ref[...], w1_ref[...], preferred_element_type=jnp.float32)
    h = jnp.tanh(h + b1_ref[...])                    # (TB, Hp) + (1, Hp)

    # Layer 2: cast activation to bf16 for the MXU, keep f32 accumulation.
    o = jnp.dot(h.astype(jnp.bfloat16), w2_ref[...],
                preferred_element_type=jnp.float32)
    y = jax.nn.sigmoid(o + b2_ref[...])              # (TB, Op) + (1, Op)

    y_ref[...] = y.astype(y_ref.dtype)


# ---------------------------------------------------------------------------
# Wrapper: padding, dtype handling, grid selection.
# ---------------------------------------------------------------------------
def _round_up(x: int, m: int) -> int:
    return pl.cdiv(x, m) * m


def _pad2(x, rows: int, cols: int):
    return jnp.pad(x, ((0, rows - x.shape[0]), (0, cols - x.shape[1])))


@functools.partial(jax.jit, static_argnames=("block_b",))
def decoder_forward(z, w1, b1, w2, b2, *, block_b: int = 256):
    """z: (B, latent); w1: (latent, hidden); b1: (hidden,);
    w2: (hidden, out); b2: (out,).  Returns (B, out) float32.

    Weights are stored (in_features, out_features), i.e. x @ W + b, which is
    the same math as PyTorch's Linear(x) = x @ W_pt.T + b.
    """
    B, L = z.shape
    L2, H = w1.shape
    H2, O = w2.shape
    assert L == L2 and H == H2 and b1.shape == (H,) and b2.shape == (O,)

    # Lane-dense padding (multiples of 128 on every feature axis). Zero
    # padding is exact: padded latent/hidden lanes contribute 0 to the dots,
    # padded output lanes are sliced off below.
    Lp = _round_up(L, 128)
    Hp = _round_up(H, 128)
    Op = _round_up(O, 128)

    # Batch: small batches -> single gridless call; large -> tile the batch.
    if B <= block_b:
        Bp = _round_up(B, 8)          # sublane-aligned
        n_tiles = 1
        tb = Bp
    else:
        Bp = _round_up(B, block_b)
        n_tiles = Bp // block_b
        tb = block_b

    # bf16 MXU operands; biases stay f32 (row vectors for sublane broadcast).
    zp = _pad2(z.astype(jnp.bfloat16), Bp, Lp)
    w1p = _pad2(w1.astype(jnp.bfloat16), Lp, Hp)
    w2p = _pad2(w2.astype(jnp.bfloat16), Hp, Op)
    b1p = _pad2(b1.astype(jnp.float32).reshape(1, H), 1, Hp)
    b2p = _pad2(b2.astype(jnp.float32).reshape(1, O), 1, Op)

    out_shape = jax.ShapeDtypeStruct((Bp, Op), jnp.float32)

    if n_tiles == 1:
        # No grid: whole problem resident in VMEM, no pipeline overhead.
        y_pad = pl.pallas_call(
            _decoder_kernel,
            out_shape=out_shape,
            in_specs=[pl.BlockSpec(memory_space=pltpu.MemorySpace.VMEM)] * 5,
            out_specs=pl.BlockSpec(memory_space=pltpu.MemorySpace.VMEM),
        )(zp, w1p, b1p, w2p, b2p)
    else:
        # Batch-tiled grid; weights/biases use constant index_maps so their
        # blocks never change -> Pallas keeps them VMEM-resident (no re-DMA
        # per step). "parallel" lets v7x's two TensorCores split the batch
        # tiles; on single-TC chips it is a plain sequential loop.
        y_pad = pl.pallas_call(
            _decoder_kernel,
            out_shape=out_shape,
            grid=(n_tiles,),
            in_specs=[
                pl.BlockSpec((tb, Lp), lambda i: (i, 0)),   # z batch tile
                pl.BlockSpec((Lp, Hp), lambda i: (0, 0)),   # W1 (resident)
                pl.BlockSpec((1, Hp), lambda i: (0, 0)),    # b1 (resident)
                pl.BlockSpec((Hp, Op), lambda i: (0, 0)),   # W2 (resident)
                pl.BlockSpec((1, Op), lambda i: (0, 0)),    # b2 (resident)
            ],
            out_specs=pl.BlockSpec((tb, Op), lambda i: (i, 0)),
            compiler_params=pltpu.CompilerParams(
                dimension_semantics=("parallel",),
            ),
        )(zp, w1p, b1p, w2p, b2p)

    return y_pad[:B, :O]


# ---------------------------------------------------------------------------
# Deterministic parameter init (PyTorch-Linear-style uniform bounds).
# ---------------------------------------------------------------------------
def init_params(key, latent_dim, hidden_size, output_size):
    k1, k2, k3, k4 = jax.random.split(key, 4)
    lim1 = 1.0 / jnp.sqrt(latent_dim)
    lim2 = 1.0 / jnp.sqrt(hidden_size)
    w1 = jax.random.uniform(k1, (latent_dim, hidden_size), jnp.float32, -lim1, lim1)
    b1 = jax.random.uniform(k2, (hidden_size,), jnp.float32, -lim1, lim1)
    w2 = jax.random.uniform(k3, (hidden_size, output_size), jnp.float32, -lim2, lim2)
    b2 = jax.random.uniform(k4, (output_size,), jnp.float32, -lim2, lim2)
    return w1, b1, w2, b2


def _reference(z, w1, b1, w2, b2):
    """Pure-JAX reference with the same bf16 operand quantization as the kernel."""
    zb = z.astype(jnp.bfloat16).astype(jnp.float32)
    w1b = w1.astype(jnp.bfloat16).astype(jnp.float32)
    w2b = w2.astype(jnp.bfloat16).astype(jnp.float32)
    h = jnp.tanh(zb @ w1b + b1)
    hb = h.astype(jnp.bfloat16).astype(jnp.float32)
    return jax.nn.sigmoid(hb @ w2b + b2)


def _reference_f32(z, w1, b1, w2, b2):
    h = jnp.tanh(z @ w1 + b1)
    return jax.nn.sigmoid(h @ w2 + b2)


if __name__ == "__main__":
    latent_dim, hidden_size, output_size = 8, 32, 64

    key = jax.random.PRNGKey(0)
    kz, kp, kz2 = jax.random.split(key, 3)
    w1, b1, w2, b2 = init_params(kp, latent_dim, hidden_size, output_size)

    # --- Small batch: gridless full-VMEM path. ---
    batch = 8
    z = jax.random.normal(kz, (batch, latent_dim), dtype=jnp.float32)
    y = jax.block_until_ready(decoder_forward(z, w1, b1, w2, b2))
    assert y.shape == (batch, output_size)
    assert jnp.allclose(y, _reference(z, w1, b1, w2, b2), atol=2e-3, rtol=2e-3)
    assert jnp.allclose(y, _reference_f32(z, w1, b1, w2, b2), atol=3e-2, rtol=3e-2)

    # --- Larger batch: batch-tiled "parallel" grid path (2 tiles of 256). ---
    big_batch = 512
    z_big = jax.random.normal(kz2, (big_batch, latent_dim), dtype=jnp.float32)
    y_big = jax.block_until_ready(decoder_forward(z_big, w1, b1, w2, b2, block_b=256))
    assert y_big.shape == (big_batch, output_size)
    assert jnp.allclose(y_big, _reference(z_big, w1, b1, w2, b2), atol=2e-3, rtol=2e-3)
    assert jnp.allclose(y_big, _reference_f32(z_big, w1, b1, w2, b2), atol=3e-2, rtol=3e-2)

    print("KERNEL_OK")
</pallas_src>

<mosaic_0001>
module attributes {stable_mosaic.version = 11 : i64} {
  func.func @_decoder_kernel(%arg0: memref<8x128xbf16, #tpu.memory_space<vmem>>, %arg1: memref<128x128xbf16, #tpu.memory_space<vmem>>, %arg2: memref<1x128xf32, #tpu.memory_space<vmem>>, %arg3: memref<128x128xbf16, #tpu.memory_space<vmem>>, %arg4: memref<1x128xf32, #tpu.memory_space<vmem>>, %arg5: memref<8x128xf32, #tpu.memory_space<vmem>>) attributes {dimension_semantics = [], scalar_prefetch = 0 : i64, scratch_operands = 0 : i64, tpu.core_type = #tpu.core_type<tc>} {
    %c0 = arith.constant 0 : index
    %c0_0 = arith.constant 0 : index
    %0 = vector.load %arg0[%c0, %c0_0] : memref<8x128xbf16, #tpu.memory_space<vmem>>, vector<8x128xbf16>
    %c0_1 = arith.constant 0 : index
    %c0_2 = arith.constant 0 : index
    %1 = vector.load %arg1[%c0_1, %c0_2] : memref<128x128xbf16, #tpu.memory_space<vmem>>, vector<128x128xbf16>
    %cst = arith.constant dense<0.000000e+00> : vector<8x128xf32>
    %2 = tpu.matmul %0, %1, %cst {dimension_numbers = #tpu.dot_dimension_numbers<[1], [0], [0], [1], [0, 0, 1, 1], [], []>} : vector<8x128xbf16>, vector<128x128xbf16>, vector<8x128xf32> -> vector<8x128xf32>
    %c0_3 = arith.constant 0 : index
    %c0_4 = arith.constant 0 : index
    %3 = vector.load %arg2[%c0_3, %c0_4] : memref<1x128xf32, #tpu.memory_space<vmem>>, vector<1x128xf32>
    %4 = vector.broadcast %3 : vector<1x128xf32> to vector<8x128xf32>
    %5 = arith.addf %2, %4 : vector<8x128xf32>
    %6 = math.tanh %5 : vector<8x128xf32>
    %7 = arith.truncf %6 : vector<8x128xf32> to vector<8x128xbf16>
    %c0_5 = arith.constant 0 : index
    %c0_6 = arith.constant 0 : index
    %8 = vector.load %arg3[%c0_5, %c0_6] : memref<128x128xbf16, #tpu.memory_space<vmem>>, vector<128x128xbf16>
    %cst_7 = arith.constant dense<0.000000e+00> : vector<8x128xf32>
    %9 = tpu.matmul %7, %8, %cst_7 {dimension_numbers = #tpu.dot_dimension_numbers<[1], [0], [0], [1], [0, 0, 1, 1], [], []>} : vector<8x128xbf16>, vector<128x128xbf16>, vector<8x128xf32> -> vector<8x128xf32>
    %c0_8 = arith.constant 0 : index
    %c0_9 = arith.constant 0 : index
    %10 = vector.load %arg4[%c0_8, %c0_9] : memref<1x128xf32, #tpu.memory_space<vmem>>, vector<1x128xf32>
    %11 = vector.broadcast %10 : vector<1x128xf32> to vector<8x128xf32>
    %12 = arith.addf %9, %11 : vector<8x128xf32>
    %13 = arith.negf %12 : vector<8x128xf32>
    %14 = math.exp %13 : vector<8x128xf32>
    %cst_10 = arith.constant 1.000000e+00 : f32
    %15 = vector.broadcast %cst_10 : f32 to vector<8x128xf32>
    %16 = arith.addf %15, %14 : vector<8x128xf32>
    %17 = arith.divf %15, %16 : vector<8x128xf32>
    %c0_11 = arith.constant 0 : index
    %c0_12 = arith.constant 0 : index
    %18 = vector.load %arg5[%c0_11, %c0_12] : memref<8x128xf32, #tpu.memory_space<vmem>>, vector<8x128xf32>
    tpu.vector_store %arg5[%c0_11, %c0_12], %17 {strides = array<i32>} : memref<8x128xf32, #tpu.memory_space<vmem>>, vector<8x128xf32>,
    return
  }
}

</mosaic_0001>

<bundles_post_ra>
// kernel: decoder_forward.1
= control target key start
LH: loop header
LB: loop body
LE: loop exit
PB: predicated region body
PF: predicated region fallthrough
CT: control target
= control target key end

     0   :  { %v394_v1 = vmov 0.0   ;;  %vm395_vm0 = vmmov 0   ;;  %s496_s0 = inlined_call_operand.vmem [shape: bf16[8,128], index: 0, kind: input, shape index: {}]   ;;  %s497_s1 = inlined_call_operand.vmem [shape: bf16[128,128], index: 1, kind: input, shape index: {}]   ;;  %s498_s2 = inlined_call_operand.vmem [shape: f32[1,128], index: 2, kind: input, shape index: {}]   ;;  %s499_s3 = inlined_call_operand.vmem [shape: bf16[128,128], index: 3, kind: input, shape index: {}]   ;;  %s500_s4 = inlined_call_operand.vmem [shape: f32[1,128], index: 4, kind: input, shape index: {}]   ;;  %s501_s5 = inlined_call_operand.hbm [shape: f32[8,128], index: 5, kind: output, shape index: {}]  }
   0x1   :  { %v348_v0 = vld [vmem:[%s497_s1] sm:$0xff]   ;;  %305 = vmatprep.subr.bf16.mxu0 %v394_v1  ;;  %325 = vmatprep.subr.bf16.mxu1 %v394_v1  ;;  %v349_v2 = vld [vmem:[%s497_s1 + $0x8] sm:$0xff]   ;;  %v350_v3 = vld [vmem:[%s497_s1 + $0x10] sm:$0xff]  }
   0x2   :  { %306 = vmatpush3.bf16.msra.mxu0 %v348_v0  ;;  %321 = vmatprep.mubr.msk.bf16.mxu0 %vm395_vm0, %v394_v1  ;;  %v356_v4 = vld [vmem:[%s499_s3] sm:$0xff]   ;;  %v351_v5 = vld [vmem:[%s497_s1 + $0x18] sm:$0xff]   ;;  %v357_v6 = vld [vmem:[%s499_s3 + $0x8] sm:$0xff]  }
   0x3   :  { %307 = vmatprep.subr.bf16.mxu0 %v394_v1  ;;  %341 = vmatprep.mubr.msk.bf16.mxu1 %vm395_vm0, %v394_v1  ;;  %v352_v7 = vld [vmem:[%s497_s1 + $0x20] sm:$0xff]   ;;  %v358_v8 = vld [vmem:[%s499_s3 + $0x10] sm:$0xff]  }
   0x4   :  { %326 = vmatpush3.bf16.msra.mxu1 %v356_v4 }
   0x5   :  { %327 = vmatprep.subr.bf16.mxu1 %v394_v1 }
   0x6   :  { %308 = vmatpush3.bf16.msra.mxu0 %v349_v2 }
   0x7   :  { %309 = vmatprep.subr.bf16.mxu0 %v394_v1 }
   0x8   :  { %328 = vmatpush3.bf16.msra.mxu1 %v357_v6 }
   0xa   :  { %310 = vmatpush3.bf16.msra.mxu0 %v350_v3 }
   0xb   :  { %311 = vmatprep.subr.bf16.mxu0 %v394_v1 }
   0xe   :  { %312 = vmatpush3.bf16.msra.mxu0 %v351_v5 }
   0xf   :  { %313 = vmatprep.subr.bf16.mxu0 %v394_v1 }
  0x10   :  { %10 = vsyncpa [#allocation3], 0  ;;  %329 = vmatprep.subr.bf16.mxu1 %v394_v1  ;;  %v353_v9 = vld [vmem:[%s497_s1 + $0x28] sm:$0xff]   ;;  %v359_v10 = vld [vmem:[%s499_s3 + $0x18] sm:$0xff]  }
  0x11   :  { %330 = vmatpush3.bf16.msra.mxu1 %v358_v8  ;;  %v354_v11 = vld [vmem:[%s497_s1 + $0x30] sm:$0xff]   ;;  %v355_v12 = vld [vmem:[%s497_s1 + $0x38] sm:$0xff]   ;;  %v22_v13 = vld [vmem:[%s496_s0] sm:$0xf] }
  0x12   :  { %314 = vmatpush3.bf16.msra.mxu0 %v352_v7  ;;  %331 = vmatprep.subr.bf16.mxu1 %v394_v1  ;;  %v360_v14 = vld [vmem:[%s499_s3 + $0x20] sm:$0xff]   ;;  %v361_v15 = vld [vmem:[%s499_s3 + $0x28] sm:$0xff]   ;;  %v362_v16 = vld [vmem:[%s499_s3 + $0x30] sm:$0xff]  }
  0x13   :  { %315 = vmatprep.subr.bf16.mxu0 %v394_v1  ;;  %v363_v17 = vld [vmem:[%s499_s3 + $0x38] sm:$0xff]   ;;  %v268_v18 = vld [vmem:[%s498_s2] ss:$0 sm:$0xff]  ;;  %s396_s2 = smov [#allocation2]  }
  0x14   :  { %v277_v26 = vld [vmem:[%s500_s4] ss:$0 sm:$0xff]  ;;  %s260_s3 = sshll.u32 %s396_s2, 4  ;;  %s261_s3 = int_to_ptr.vmem [resolvable:$true] %s260_s3 }
  0x15   :  { %332 = vmatpush3.bf16.msra.mxu1 %v359_v10  ;;  %s370_s29 = scalar_lea.vmem %s261_s3, 128  ;;  %p375_p1 = scmp.lt.s32.totalorder %s261_s3, %s261_s3 }
  0x16   :  { %316 = vmatpush3.bf16.msra.mxu0 %v353_v9  ;;  %333 = vmatprep.subr.bf16.mxu1 %v394_v1  ;;  %p371_p0 = scmp.ne.s32.totalorder %s261_s3, %s370_s29  ;;  %p376_p2 = scmp.lt.s32.totalorder %s370_s29, %s370_s29 }
  0x17   :  { %317 = vmatprep.subr.bf16.mxu0 %v394_v1 }
  0x18   :  { %p377_p3 = por %p376_p2, %p375_p1 }
  0x19   :  { %334 = vmatpush3.bf16.msra.mxu1 %v360_v14 }
  0x1a   :  { %318 = vmatpush3.bf16.msra.mxu0 %v354_v11  ;;  %335 = vmatprep.subr.bf16.mxu1 %v394_v1  ;;  %p378_p4 = pnand %p377_p3, %p371_p0 }
  0x1b   :  { %319 = vmatprep.subr.bf16.mxu0 %v394_v1 }
  0x1d   :  { %336 = vmatpush3.bf16.msra.mxu1 %v361_v15 }
  0x1e   :  { %320 = vmatpush3.bf16.msra.mxu0 %v355_v12  ;;  %337 = vmatprep.subr.bf16.mxu1 %v394_v1 }
  0x21   :  { %322 = vmatmul.mubr.bf16.vlgmr.msra.gmra.mrb[0].mxu0 %v22_v13  ;;  %338 = vmatpush3.bf16.msra.mxu1 %v362_v16 }
  0x22   :  { %339 = vmatprep.subr.bf16.mxu1 %v394_v1 }
  0x25   :  { %340 = vmatpush3.bf16.msra.mxu1 %v363_v17 }
  0xf4   :  { %v128_v19 = vpop.f32.mrb[0].mxu0 }
  0xf5   :  { %v129_v20 = vadd.f32 %v268_v18, %v128_v19  ;;  %v323_v21 = vpop.f32.mrb[1].mxu0 }
  0xf6   :  { %v131_v22 = vpop.f32.mrb[2].mxu0 }
  0xf7   :  { %364 = vtanh.f32 %v129_v20  ;;  %v324_v23 = vpop.f32.mrb[3].mxu0 }
 0x101   :  { %v365_v24 = vpop.eup %364 }
 0x102   :  { %v135_v25 = vpack.c.bf16 %v365_v24, %v365_v24 }
 0x104   :  { %342 = vmatmul.mubr.bf16.vlgmr.msra.gmra.mrb[0].mxu1 %v135_v25 }
 0x1d7   :  { %v241_v27 = vpop.f32.mrb[0].mxu1 }
 0x1d8   :  { %v242_v28 = vadd.f32 %v277_v26, %v241_v27  ;;  %v343_v29 = vpop.f32.mrb[1].mxu1 }
 0x1d9   :  { %v244_v30 = vpop.f32.mrb[2].mxu1 }
 0x1da   :  { %v286_v31 = vmul.f32 -1.442695, %v242_v28  ;;  %v344_v32 = vpop.f32.mrb[3].mxu1 }
 0x1dc   :  { %366 = vpow2.f32 %v286_v31 }
 0x1e6   :  { %v367_v33 = vpop.eup %366 }
 0x1e7   :  { %v250_v34 = vadd.f32 1.0, %v367_v33 }
 0x1e9   :  { %368 = vrcp.f32 %v250_v34 }
 0x1f3   :  { %v369_v35 = vpop.eup %368 }
 0x1f4   :  { %253 = vst [vmem:[#allocation2] sm:$0xff] %v369_v35 }
 0x1f5   :  { %381 = shalt.err (!%p378_p4)
}
 0x1f6   :  { %s382_s6 = scalar_lea.hbm %s501_s5, 128 }
 0x1f7   :  { %p383_p5 = scmp.ne.s32.totalorder %s501_s5, %s382_s6  ;;  %p386_p6 = scmp.lt.u32.totalorder %s382_s6, %s501_s5 }
 0x1f9   :  { %p388_p7 = pnand %p386_p6, %p383_p5 }
 0x1fb   :  { %391 = shalt.err (!%p388_p7)
}
 0x1fc   :  { %263 = dma.vmem_to_hbm [thread:$0]  %s261_s3, 128, %s501_s5, [#allocation3]  }
 0x1fd   :  { %392 = dma.done.wait [#allocation3], 128  }
 0x1fe   :  { %393 = vsyncadd [#allocation3], 4294967168 }
 0x1ff   :  { %267 = vsyncpa [#allocation3], 1 }

</bundles_post_ra>
